<compile_context>
chip_gen: v7x
topology: tpu7x:2x2x1
jax: 0.10.0
libtpu: 0.0.40
codegen_flags: <defaults>
</compile_context>

<pallas_src>
import functools

import jax
import jax.numpy as jnp
from jax import lax
from jax.experimental import pallas as pl
from jax.experimental.pallas import tpu as pltpu

C0 = 40          # conv channels
K0 = 13          # conv0 kernel width
H_IN = 2         # input "height" (electrode pairs)
W_IN = 750       # input width (time samples)
W0_OUT = W_IN - K0 + 1                    # 738
POOL_K = 35
POOL_S = 7
W_POOL = (W0_OUT - POOL_K) // POOL_S + 1  # 101
W_PAD = 128                               # lane-padded pool width
N_FEAT = C0 * W_POOL                      # 4040
N_CLS = 2
BN_EPS = 1e-5
N_TAP = H_IN * K0 + 1                     # 26 (row, tap) pairs + 1 bias row = 27
NB_MAX = 32                               # examples per grid step (VMEM ~11 MB)


def _shallowconv_kernel(xw_ref, w_ref, pm_ref, out_ref, act_ref, *, nb):
    """nb batch examples per grid step.

    xw_ref : (nb, 27, 738)   im2col windows (+ a row of ones for the bias)
    w_ref  : (40, 27)        conv0*conv1*BatchNorm fused weight (+ bias col)
    pm_ref : (738, 128)      avg-pool Toeplitz matrix (cols 101..127 are zero)
    out_ref: (nb, 40, 128)   pooled features (lane-padded)
    act_ref: (nb*40, 738)    VMEM scratch for the post-activation maps
    """
    w = w_ref[...]                                            # hoisted once

    def conv_one(n, carry):
        # Fused conv0 + conv1 + BatchNorm + bias: one MXU matmul per example
        # (bias comes out of the matmul via the ones row / bias column).
        z = jnp.dot(w, xw_ref[n],
                    preferred_element_type=jnp.float32)       # (40, 738)
        # ELU.  exp(min(z,0)) - 1 kept instead of expm1 (expm1 lowering on
        # Mosaic not guaranteed); cancellation near z=0 is << the 1e-3 check.
        act = jnp.where(z > 0.0, z, jnp.exp(jnp.minimum(z, 0.0)) - 1.0)
        act_ref[pl.ds(pl.multiple_of(n * C0, C0), C0), :] = act
        return carry

    lax.fori_loop(0, nb, conv_one, 0, unroll=True)

    # AvgPool2d((1,35), stride (1,7)) for ALL nb examples: one MXU matmul
    # with M = nb*40 rows and a lane-dense 128-wide output.
    pooled = jnp.dot(act_ref[...], pm_ref[...],
                     preferred_element_type=jnp.float32)      # (nb*40, 128)
    out_ref[...] = pooled.reshape(nb, C0, W_PAD)


def shallow_conv_forward(x, params, nb=None):
    """x: (B, 1, 2, 750) NCHW float32 -> logits (B, 2)."""
    B = x.shape[0]
    if nb is None:
        # Keep >= 2 grid steps (v7x has 2 TensorCores); cap to bound VMEM.
        nb = max(1, min(NB_MAX, -(-B // 2)))
    n_steps = -(-B // nb)
    b_pad = n_steps * nb

    # im2col as ONE gather: row j = r*13 + k gathers x[r, t+k]; row 26 gathers
    # a constant 1.0 (folds the bias into the conv matmul).
    x_flat = x.reshape(B, H_IN * W_IN).astype(jnp.float32)           # (B, 1500)
    x_aug = jnp.concatenate(
        [x_flat, jnp.ones((B, 1), jnp.float32)], axis=1)             # (B, 1501)
    r = jnp.arange(H_IN)[:, None]
    k = jnp.arange(K0)[None, :]
    row_base = (r * W_IN + k).reshape(H_IN * K0)                     # (26,)
    t = jnp.arange(W0_OUT)
    idx = jnp.concatenate(
        [row_base[:, None] + t[None, :],
         jnp.full((1, W0_OUT), H_IN * W_IN, jnp.int32)], axis=0)     # (27, 738)
    xwin = jnp.take(x_aug, idx, axis=1)                              # (B, 27, 738)
    if b_pad != B:
        xwin = jnp.pad(xwin, ((0, b_pad - B), (0, 0), (0, 0)))

    # Fold conv0, conv1, BatchNorm and both biases into one (40, 27) weight.
    #   c1[o,t] = sum_{r,k} Weff[o, r*13+k] * x[r, t+k] + beff[o]
    hi = lax.Precision.HIGHEST
    w0 = params["conv0_w"][:, 0, 0, :]                    # (40, 13)
    b0 = params["conv0_b"]                                # (40,)
    w1h0 = params["conv1_w"][:, :, 0, 0]                  # (40, 40)
    w1h1 = params["conv1_w"][:, :, 1, 0]                  # (40, 40)
    weff = jnp.concatenate([jnp.dot(w1h0, w0, precision=hi),
                            jnp.dot(w1h1, w0, precision=hi)], axis=1)  # (40,26)
    beff = jnp.dot(w1h0 + w1h1, b0, precision=hi)                       # (40,)
    scale = params["bn_gamma"] / jnp.sqrt(params["bn_var"] + BN_EPS)
    bfold = scale * beff + params["bn_beta"] - params["bn_mean"] * scale
    wfold = jnp.concatenate([weff * scale[:, None], bfold[:, None]],
                            axis=1)                       # (40, 27)

    # Lane-padded Toeplitz average-pool matrix (exact 1/35 entries, f32).
    w_idx = jnp.arange(W0_OUT)[:, None]
    p_idx = jnp.arange(W_PAD)[None, :]
    pm = (((w_idx >= POOL_S * p_idx) & (w_idx < POOL_S * p_idx + POOL_K)
           & (p_idx < W_POOL)).astype(jnp.float32) / POOL_K)          # (738, 128)

    kernel = functools.partial(_shallowconv_kernel, nb=nb)
    pooled = pl.pallas_call(
        kernel,
        out_shape=jax.ShapeDtypeStruct((b_pad, C0, W_PAD), jnp.float32),
        grid=(n_steps,),
        in_specs=[
            pl.BlockSpec((nb, N_TAP, W0_OUT), lambda b: (b, 0, 0)),
            pl.BlockSpec((C0, N_TAP), lambda b: (0, 0)),
            pl.BlockSpec((W0_OUT, W_PAD), lambda b: (0, 0)),
        ],
        out_specs=pl.BlockSpec((nb, C0, W_PAD), lambda b: (b, 0, 0)),
        scratch_shapes=[pltpu.VMEM((nb * C0, W0_OUT), jnp.float32)],
        compiler_params=pltpu.CompilerParams(
            dimension_semantics=("parallel",),
            vmem_limit_bytes=32 * 1024 * 1024),
    )(xwin, wfold, pm)

    # Dropout(p=0.5) is identity at inference.  Linear(4040, 2) as one XLA
    # GEMM on the kernel's lane-dense pooled output; the 101..127 pad columns
    # are sliced off first so the PyTorch C-major flatten order is preserved.
    feats = pooled[:B, :, :W_POOL].reshape(B, N_FEAT)
    return feats @ params["fc_w"].T + params["fc_b"]


def reference_forward(x, params):
    """Pure-JAX reference matching the PyTorch eval-mode forward."""
    dn = ("NCHW", "OIHW", "NCHW")
    out = lax.conv_general_dilated(x, params["conv0_w"], (1, 1), "VALID",
                                   dimension_numbers=dn)
    out = out + params["conv0_b"][None, :, None, None]
    out = lax.conv_general_dilated(out, params["conv1_w"], (1, 1), "VALID",
                                   dimension_numbers=dn)
    scale = params["bn_gamma"] / jnp.sqrt(params["bn_var"] + BN_EPS)
    out = ((out - params["bn_mean"][None, :, None, None])
           * scale[None, :, None, None]
           + params["bn_beta"][None, :, None, None])
    out = jnp.where(out > 0, out, jnp.expm1(out))        # ELU
    out = lax.reduce_window(out, 0.0, lax.add,
                            (1, 1, 1, POOL_K), (1, 1, 1, POOL_S), "VALID") / POOL_K
    out = out.reshape(out.shape[0], -1)                  # (B, 4040)
    return out @ params["fc_w"].T + params["fc_b"]


if __name__ == "__main__":
    key = jax.random.PRNGKey(0)
    ks = jax.random.split(key, 10)
    B = 2
    x = jax.random.normal(ks[0], (B, 1, H_IN, W_IN), jnp.float32)
    params = {
        "conv0_w": 0.10 * jax.random.normal(ks[1], (C0, 1, 1, K0), jnp.float32),
        "conv0_b": 0.10 * jax.random.normal(ks[2], (C0,), jnp.float32),
        "conv1_w": 0.10 * jax.random.normal(ks[3], (C0, C0, 2, 1), jnp.float32),
        "bn_gamma": 1.0 + 0.1 * jax.random.normal(ks[4], (C0,), jnp.float32),
        "bn_beta": 0.10 * jax.random.normal(ks[5], (C0,), jnp.float32),
        "bn_mean": 0.10 * jax.random.normal(ks[6], (C0,), jnp.float32),
        "bn_var": jax.random.uniform(ks[7], (C0,), jnp.float32, 0.5, 1.5),
        "fc_w": 0.02 * jax.random.normal(ks[8], (N_CLS, N_FEAT), jnp.float32),
        "fc_b": 0.10 * jax.random.normal(ks[9], (N_CLS,), jnp.float32),
    }

    fwd = jax.jit(shallow_conv_forward)
    y = jax.block_until_ready(fwd(x, params))
    y_ref = jax.block_until_ready(reference_forward(x, params))
    assert y.shape == (B, N_CLS), y.shape
    err = float(jnp.max(jnp.abs(y - y_ref)))
    assert err < 1e-3, f"mismatch vs reference: {err}"
    print("KERNEL_OK")
</pallas_src>

<mosaic_0001>
module attributes {stable_mosaic.version = 11 : i64} {
  func.func @_shallowconv_kernel(%arg0: i32, %arg1: memref<1x27x738xf32, #tpu.memory_space<vmem>>, %arg2: memref<40x27xf32, #tpu.memory_space<vmem>>, %arg3: memref<738x128xf32, #tpu.memory_space<vmem>>, %arg4: memref<1x40x128xf32, #tpu.memory_space<vmem>>, %arg5: memref<40x738xf32, #tpu.memory_space<vmem>>) attributes {dimension_semantics = [#tpu.dimension_semantics<parallel>], iteration_bounds = array<i64: 2>, scalar_prefetch = 0 : i64, scratch_operands = 1 : i64, tpu.core_type = #tpu.core_type<tc>, window_params = [{transform_indices = @transform_0, window_bounds = array<i64: 1, 27, 738>}, {pipeline_mode = #tpu.pipeline_mode<synchronous>, transform_indices = @transform_1, window_bounds = array<i64: 40, 27>}, {pipeline_mode = #tpu.pipeline_mode<synchronous>, transform_indices = @transform_2, window_bounds = array<i64: 738, 128>}, {transform_indices = @transform_3, window_bounds = array<i64: 1, 40, 128>}]} {
    %c0 = arith.constant 0 : index
    %c0_0 = arith.constant 0 : index
    %0 = vector.load %arg2[%c0, %c0_0] : memref<40x27xf32, #tpu.memory_space<vmem>>, vector<40x27xf32>
    %c0_i32 = arith.constant 0 : i32
    %1 = arith.index_cast %c0_i32 : i32 to index
    %c0_1 = arith.constant 0 : index
    %c0_2 = arith.constant 0 : index
    %2 = vector.load %arg1[%1, %c0_1, %c0_2] : memref<1x27x738xf32, #tpu.memory_space<vmem>>, vector<1x27x738xf32>
    %3 = vector.shape_cast %2 : vector<1x27x738xf32> to vector<27x738xf32>
    %cst = arith.constant dense<0.000000e+00> : vector<40x738xf32>
    %4 = tpu.matmul %0, %3, %cst {dimension_numbers = #tpu.dot_dimension_numbers<[1], [0], [0], [1], [0, 0, 1, 1], [], []>} : vector<40x27xf32>, vector<27x738xf32>, vector<40x738xf32> -> vector<40x738xf32>
    %cst_3 = arith.constant 0.000000e+00 : f32
    %5 = vector.broadcast %cst_3 : f32 to vector<40x738xf32>
    %6 = arith.cmpf ogt, %4, %5 : vector<40x738xf32>
    %cst_4 = arith.constant 0.000000e+00 : f32
    %7 = vector.broadcast %cst_4 : f32 to vector<40x738xf32>
    %8 = arith.minimumf %4, %7 : vector<40x738xf32>
    %9 = math.exp %8 : vector<40x738xf32>
    %cst_5 = arith.constant 1.000000e+00 : f32
    %10 = vector.broadcast %cst_5 : f32 to vector<40x738xf32>
    %11 = arith.subf %9, %10 : vector<40x738xf32>
    %12 = arith.select %6, %4, %11 : vector<40x738xi1>, vector<40x738xf32>
    %c40_i32 = arith.constant 40 : i32
    %13 = arith.muli %c0_i32, %c40_i32 : i32
    %14 = tpu.assume_multiple %13, 40 : i32
    %15 = arith.index_cast %14 : i32 to index
    %c0_6 = arith.constant 0 : index
    %16 = vector.load %arg5[%15, %c0_6] : memref<40x738xf32, #tpu.memory_space<vmem>>, vector<40x738xf32>
    tpu.vector_store %arg5[%15, %c0_6], %12 {strides = array<i32>} : memref<40x738xf32, #tpu.memory_space<vmem>>, vector<40x738xf32>,
    %c1_i32 = arith.constant 1 : i32
    %c0_7 = arith.constant 0 : index
    %c0_8 = arith.constant 0 : index
    %17 = vector.load %arg5[%c0_7, %c0_8] : memref<40x738xf32, #tpu.memory_space<vmem>>, vector<40x738xf32>
    %c0_9 = arith.constant 0 : index
    %c0_10 = arith.constant 0 : index
    %18 = vector.load %arg3[%c0_9, %c0_10] : memref<738x128xf32, #tpu.memory_space<vmem>>, vector<738x128xf32>
    %cst_11 = arith.constant dense<0.000000e+00> : vector<40x128xf32>
    %19 = tpu.matmul %17, %18, %cst_11 {dimension_numbers = #tpu.dot_dimension_numbers<[1], [0], [0], [1], [0, 0, 1, 1], [], []>} : vector<40x738xf32>, vector<738x128xf32>, vector<40x128xf32> -> vector<40x128xf32>
    %20 = vector.shape_cast %19 : vector<40x128xf32> to vector<1x40x128xf32>
    %c0_12 = arith.constant 0 : index
    %c0_13 = arith.constant 0 : index
    %c0_14 = arith.constant 0 : index
    %21 = vector.load %arg4[%c0_12, %c0_13, %c0_14] : memref<1x40x128xf32, #tpu.memory_space<vmem>>, vector<1x40x128xf32>
    tpu.vector_store %arg4[%c0_12, %c0_13, %c0_14], %20 {strides = array<i32>} : memref<1x40x128xf32, #tpu.memory_space<vmem>>, vector<1x40x128xf32>,
    return
  }
  func.func @transform_0(%arg0: i32) -> (i32, i32, i32) {
    %c0_i32 = arith.constant 0 : i32
    %c0_i32_0 = arith.constant 0 : i32
    %c0_i32_1 = arith.constant 0 : i32
    return %arg0, %c0_i32, %c0_i32_0 : i32, i32, i32
  }
  func.func @transform_1(%arg0: i32) -> (i32, i32) {
    %c0_i32 = arith.constant 0 : i32
    %c0_i32_0 = arith.constant 0 : i32
    %c0_i32_1 = arith.constant 0 : i32
    return %c0_i32, %c0_i32_0 : i32, i32
  }
  func.func @transform_2(%arg0: i32) -> (i32, i32) {
    %c0_i32 = arith.constant 0 : i32
    %c0_i32_0 = arith.constant 0 : i32
    %c0_i32_1 = arith.constant 0 : i32
    return %c0_i32, %c0_i32_0 : i32, i32
  }
  func.func @transform_3(%arg0: i32) -> (i32, i32, i32) {
    %c0_i32 = arith.constant 0 : i32
    %c0_i32_0 = arith.constant 0 : i32
    %c0_i32_1 = arith.constant 0 : i32
    return %arg0, %c0_i32, %c0_i32_0 : i32, i32, i32
  }
}

</mosaic_0001>

<bundles_post_ra>
// kernel: shallow_conv_forward.1
= control target key start
LH: loop header
LB: loop body
LE: loop exit
PB: predicated region body
PF: predicated region fallthrough
CT: control target
= control target key end

     0   :  { %s1606_s12 = smov 0   ;;  %s2156_s0 = inlined_call_operand.vmem [shape: f32[2,27,738], index: 0, kind: input, shape index: {}]   ;;  %s2157_s1 = inlined_call_operand.vmem [shape: f32[40,27], index: 1, kind: input, shape index: {}]   ;;  %s2158_s2 = inlined_call_operand.vmem [shape: f32[738,128], index: 2, kind: input, shape index: {}]   ;;  %s2159_s3 = inlined_call_operand.vmem [shape: f32[2,40,128], index: 3, kind: output, shape index: {}]  }
   0x1 LB: > { %s1206_s13 = sadd.s32 4294967295, %s1581_s12   ;;  %p1210_p0 = scmp.ge.s32.totalorder %s1581_s12, 1  ;;  %s1581_s12 = sphi %s1606_s12, %s13_s12  }
   0x2   : > { %p137_p1 = scmp.lt.s32.totalorder %s1581_s12, 3 }
   0x4   : > { %p138_p2 = pnand %p1210_p0, %p137_p1 }
   0x5   : > { %p161_p3 = scmp.lt.s32.totalorder (!%p138_p2), %s1206_s13, 1  ;;  %v1583_v0 = vmov (!%p138_p2), 0.0   ;;  %v780_v1 = vld [vmem:[%s2158_s2 + $0x80] sm:$0xff] (!%p138_p2)  ;;  %vm216_vm0 = vcmask (!%p138_p2), 1042432   ;;  %v781_v2 = vld [vmem:[%s2158_s2 + $0x88] sm:$0xff] (!%p138_p2)  ;;  %vm1584_vm1 = vmmov (!%p138_p2), 1  }
   0x6   : > { %141 = sbr.rel (%p138_p2) target bundleno = 549 (0x225), region = 32  ;;  %299 = vmatprep.mubr.f32.mxu0 (!%p138_p2), %v1583_v0  ;;  %v764_v3 = vld [vmem:[%s2158_s2] sm:$0xff] (!%p138_p2)  ;;  %v765_v4 = vld [vmem:[%s2158_s2 + $0x8] sm:$0xff] (!%p138_p2)  ;;  %v1396_v5 = vpack.c.bf16 (!%p138_p2), %v781_v2, %v780_v1  ;;  %vm1635_vm2 = vmpackc.low (!%p138_p2), %vm216_vm0, %vm1584_vm1  ;;  %vm200_vm3 = vcmask (!%p138_p2), 220160  }
   0x7   : > { %v1398_v6 = vpack.c.bf16 (!%p138_p2), %v765_v4, %v764_v3  ;;  %v171_v27 = vld [vmem:[%s2157_s1] sm:$0xff] (!%p138_p2)  ;;  %v172_v34 = vld [vmem:[%s2157_s1 + $0x8] sm:$0xff] (!%p138_p2)  ;;  %v173_v37 = vld [vmem:[%s2157_s1 + $0x10] sm:$0xff] (!%p138_p2) }
   0x8   : > { %1397 = vmatprep.subr.bf16.mxu1 (!%p138_p2), %v1396_v5  ;;  %v174_v38 = vld [vmem:[%s2157_s1 + $0x18] sm:$0xff] (!%p138_p2)  ;;  %v175_v39 = vld [vmem:[%s2157_s1 + $0x20] sm:$0xff] (!%p138_p2)  ;;  %v782_v49 = vld [vmem:[%s2158_s2 + $0x90] sm:$0xff] (!%p138_p2) }
   0x9   : > { %1399 = vmatpush3.bf16.msra.mxu1 (!%p138_p2), %v1398_v6  ;;  %v783_v50 = vld [vmem:[%s2158_s2 + $0x98] sm:$0xff] (!%p138_p2)  ;;  %v766_v52 = vld [vmem:[%s2158_s2 + $0x10] sm:$0xff] (!%p138_p2)  ;;  %v784_v55 = vld [vmem:[%s2158_s2 + $0xa0] sm:$0xff] (!%p138_p2) }
   0xa   : > { %v1400_v51 = vpack.c.bf16 (!%p138_p2), %v783_v50, %v782_v49  ;;  %v767_v53 = vld [vmem:[%s2158_s2 + $0x18] sm:$0xff] (!%p138_p2)  ;;  %v785_v56 = vld [vmem:[%s2158_s2 + $0xa8] sm:$0xff] (!%p138_p2)  ;;  %v768_v58 = vld [vmem:[%s2158_s2 + $0x20] sm:$0xff] (!%p138_p2)  ;;  %v1585_v49 = vmov (!%p138_p2), 0.0|0.0  }
   0xb   : > { %v1402_v54 = vpack.c.bf16 (!%p138_p2), %v767_v53, %v766_v52  ;;  %v1404_v57 = vpack.c.bf16 (!%p138_p2), %v785_v56, %v784_v55  ;;  %v769_v59 = vld [vmem:[%s2158_s2 + $0x28] sm:$0xff] (!%p138_p2)  ;;  %v786_v61 = vld [vmem:[%s2158_s2 + $0xb0] sm:$0xff] (!%p138_p2)  ;;  %v787_v62 = vld [vmem:[%s2158_s2 + $0xb8] sm:$0xff] (!%p138_p2) }
   0xc   : > { %1401 = vmatprep.subr.bf16.mxu1 (!%p138_p2), %v1400_v51  ;;  %v1406_v60 = vpack.c.bf16 (!%p138_p2), %v769_v59, %v768_v58  ;;  %v1408_v63 = vpack.c.bf16 (!%p138_p2), %v787_v62, %v786_v61  ;;  %v770_v1 = vld [vmem:[%s2158_s2 + $0x30] sm:$0xff] (!%p138_p2)  ;;  %v771_v2 = vld [vmem:[%s2158_s2 + $0x38] sm:$0xff] (!%p138_p2)  ;;  %v788_v4 = vld [vmem:[%s2158_s2 + $0xc0] sm:$0xff] (!%p138_p2) }
   0xd   : > { %s2163_s13 = smov (!%p161_p3, %s1206_s13), 1  ;;  %1403 = vmatpush3.bf16.msra.mxu1 %v1402_v54  ;;  %v1410_v3 = vpack.c.bf16 %v771_v2, %v770_v1  ;;  %v789_v5 = vld [vmem:[%s2158_s2 + $0xc8] sm:$0xff]  ;;  %v772_v7 = vld [vmem:[%s2158_s2 + $0x40] sm:$0xff]  ;;  %v802_v50 = vld [vmem:[%s2158_s2 + $0x130] sm:$0xff] }
   0xe   : > { %s1502_s22 = smul.u32 192, %s2163_s13  ;;  %1405 = vmatprep.subr.bf16.mxu1 %v1404_v57  ;;  %v1412_v6 = vpack.c.bf16 %v789_v5, %v788_v4  ;;  %v803_v51 = vld [vmem:[%s2158_s2 + $0x138] sm:$0xff]  ;;  %v820_v53 = vld [vmem:[%s2158_s2 + $0x1c0] sm:$0xff]  ;;  %v821_v54 = vld [vmem:[%s2158_s2 + $0x1c8] sm:$0xff] }
   0xf   : > { %v1442_v52 = vpack.c.bf16 %v803_v51, %v802_v50  ;;  %v1444_v55 = vpack.c.bf16 %v821_v54, %v820_v53  ;;  %v804_v56 = vld [vmem:[%s2158_s2 + $0x140] sm:$0xff]  ;;  %v805_v57 = vld [vmem:[%s2158_s2 + $0x148] sm:$0xff]  ;;  %v822_v59 = vld [vmem:[%s2158_s2 + $0x1d0] sm:$0xff]  ;;  %s1503_s14 = smul.u32 40, %s2163_s13 }
  0x10   : > { %s1633_s25 = scalar_lea.vmem %s2156_s0, %s1502_s22  ;;  %v1446_v58 = vpack.c.bf16 %v805_v57, %v804_v56  ;;  %v806_v62 = vld [vmem:[%s2158_s2 + $0x150] sm:$0xff]  ;;  %v824_v2 = vld [vmem:[%s2158_s2 + $0x1e0] sm:$0xff]  ;;  %v831_v50 = vld [vmem:[%s2158_s2 + $0x218] sm:$0xff] }
  0x11   : > { %v177_v8 = vld [vmem:[%s1633_s25 + $0x8] sm:$0xff]  ;;  %v183_v9 = vld [vmem:[%s1633_s25 + $0x38] sm:$0xff]  ;;  %v176_v10 = vld [vmem:[%s1633_s25] sm:$0xff]  ;;  %1407 = vmatpush3.bf16.msra.mxu1 %v1406_v60  ;;  %s170_s17 = scalar_lea.vmem %s2159_s3, %s1503_s14 }
  0x12   : > { %v1366_v11 = vpack.c.bf16 %v183_v9, %v177_v8  ;;  %v182_v12 = vld [vmem:[%s1633_s25 + $0x30] sm:$0xff]  ;;  %v189_v13 = vld [vmem:[%s1633_s25 + $0x68] sm:$0xff]  ;;  %v195_v14 = vld [vmem:[%s1633_s25 + $0x98] sm:$0x7]  ;;  %1409 = vmatprep.subr.bf16.mxu1 %v1408_v63 }
  0x13   : > { %v1368_v15 = vpack.c.bf16 %v182_v12, %v176_v10  ;;  %v1370_v16 = vpack.c.bf16 %v195_v14, %v189_v13  ;;  %v188_v17 = vld [vmem:[%s1633_s25 + $0x60] sm:$0xff]  ;;  %v194_v18 = vld [vmem:[%s1633_s25 + $0x90] sm:$0x7]  ;;  %v179_v19 = vld [vmem:[%s1633_s25 + $0x18] sm:$0xff] }
  0x14   : > { %1367 = vmatprep.subr.bf16.mxu0 %v1366_v11  ;;  %v185_v20 = vld [vmem:[%s1633_s25 + $0x48] sm:$0xff]  ;;  %v1373_v21 = vpack.c.bf16 %v194_v18, %v188_v17  ;;  %v178_v23 = vld [vmem:[%s1633_s25 + $0x10] sm:$0xff]  ;;  %v184_v24 = vld [vmem:[%s1633_s25 + $0x40] sm:$0xff] }
  0x15   : > { %1369 = vmatpush1.bf16.msra.mxu0 %v1368_v15  ;;  %v1376_v22 = vpack.c.bf16 %v185_v20, %v179_v19  ;;  %v191_v25 = vld [vmem:[%s1633_s25 + $0x78] sm:$0xff]  ;;  %v197_v26 = vld [vmem:[%s1633_s25 + $0xa8] sm:$0x7]  ;;  %v1378_v28 = vpack.c.bf16 %v184_v24, %v178_v23  ;;  %v190_v30 = vld [vmem:[%s1633_s25 + $0x70] sm:$0xff]  ;;  %1411 = vmatpush3.bf16.msra.mxu1 %v1410_v3 }
  0x16   : > { %1372 = vmatprep.subr.msk.bf16.mxu0 %vm1635_vm2, %v1370_v16  ;;  %v1380_v29 = vpack.c.bf16 %v197_v26, %v191_v25  ;;  %v196_v31 = vld [vmem:[%s1633_s25 + $0xa0] sm:$0x7]  ;;  %v181_v32 = vld [vmem:[%s1633_s25 + $0x28] sm:$0xff]  ;;  %v187_v33 = vld [vmem:[%s1633_s25 + $0x58] sm:$0xff]  ;;  %1413 = vmatprep.subr.bf16.mxu1 %v1412_v6 }
  0x17   : > { %v1383_v35 = vpack.c.bf16 %v196_v31, %v190_v30  ;;  %v1386_v36 = vpack.c.bf16 %v187_v33, %v181_v32  ;;  %v180_v40 = vld [vmem:[%s1633_s25 + $0x20] sm:$0xff]  ;;  %v186_v41 = vld [vmem:[%s1633_s25 + $0x50] sm:$0xff]  ;;  %v193_v42 = vld [vmem:[%s1633_s25 + $0x88] sm:$0xff] }
  0x18   : > { %v199_v43 = vld [vmem:[%s1633_s25 + $0xb8] sm:$0x7]  ;;  %v1388_v44 = vpack.c.bf16 %v186_v41, %v180_v40  ;;  %v192_v46 = vld [vmem:[%s1633_s25 + $0x80] sm:$0xff]  ;;  %v198_v47 = vld [vmem:[%s1633_s25 + $0xb0] sm:$0x7] }
  0x19   : > { %1375 = vmatpush1.bf16.msk.msra.mxu0 %vm1635_vm2, %v1373_v21  ;;  %v1390_v45 = vpack.c.bf16 %v199_v43, %v193_v42  ;;  %v1393_v48 = vpack.c.bf16 %v198_v47, %v192_v46  ;;  %v773_v8 = vld [vmem:[%s2158_s2 + $0x48] sm:$0xff]  ;;  %v790_v10 = vld [vmem:[%s2158_s2 + $0xd0] sm:$0xff]  ;;  %v791_v11 = vld [vmem:[%s2158_s2 + $0xd8] sm:$0xff] }
  0x1a   : > { %1377 = vmatprep.subr.bf16.mxu0 %v1376_v22  ;;  %v1414_v9 = vpack.c.bf16 %v773_v8, %v772_v7  ;;  %v1416_v12 = vpack.c.bf16 %v791_v11, %v790_v10  ;;  %v774_v13 = vld [vmem:[%s2158_s2 + $0x50] sm:$0xff]  ;;  %v775_v14 = vld [vmem:[%s2158_s2 + $0x58] sm:$0xff]  ;;  %v812_v15 = vld [vmem:[%s2158_s2 + $0x180] sm:$0xff] }
  0x1b   : > { %v1418_v16 = vpack.c.bf16 %v775_v14, %v774_v13  ;;  %v813_v17 = vld [vmem:[%s2158_s2 + $0x188] sm:$0xff]  ;;  %v796_v18 = vld [vmem:[%s2158_s2 + $0x100] sm:$0xff]  ;;  %v798_v30 = vld [vmem:[%s2158_s2 + $0x110] sm:$0xff] }
  0x1c   : > { %1215 = vmatmul.mubr.msk.f32.vlgmr.msra.gmra.mrb[0].mxu0 %vm200_vm3, %v171_v27  ;;  %1415 = vmatpush3.bf16.msra.mxu1 %v1414_v9  ;;  %v797_v19 = vld [vmem:[%s2158_s2 + $0x108] sm:$0xff]  ;;  %v1428_v20 = vpack.c.bf16 %v813_v17, %v812_v15  ;;  %v792_v22 = vld [vmem:[%s2158_s2 + $0xe0] sm:$0xff]  ;;  %v799_v31 = vld [vmem:[%s2158_s2 + $0x118] sm:$0xff] }
  0x1d   : > { %305 = vmatprep.mubr.f32.mxu0 %v1583_v0  ;;  %1379 = vmatpush1.bf16.msra.mxu0 %v1378_v28  ;;  %v1430_v21 = vpack.c.bf16 %v797_v19, %v796_v18  ;;  %v793_v23 = vld [vmem:[%s2158_s2 + $0xe8] sm:$0xff]  ;;  %v776_v25 = vld [vmem:[%s2158_s2 + $0x60] sm:$0xff]  ;;  %v1434_v33 = vpack.c.bf16 %v799_v31, %v798_v30  ;;  %v818_v46 = vld [vmem:[%s2158_s2 + $0x1b0] sm:$0xff] }
  0x1e   : > { %1382 = vmatprep.subr.msk.bf16.mxu0 %vm1635_vm2, %v1380_v29  ;;  %1417 = vmatprep.subr.bf16.mxu1 %v1416_v12  ;;  %v1420_v24 = vpack.c.bf16 %v793_v23, %v792_v22  ;;  %v777_v26 = vld [vmem:[%s2158_s2 + $0x68] sm:$0xff]  ;;  %v815_v29 = vld [vmem:[%s2158_s2 + $0x198] sm:$0xff]  ;;  %v800_v42 = vld [vmem:[%s2158_s2 + $0x120] sm:$0xff] }
  0x1f   : > { %v1422_v28 = vpack.c.bf16 %v777_v26, %v776_v25  ;;  %v817_v41 = vld [vmem:[%s2158_s2 + $0x1a8] sm:$0xff]  ;;  %v819_v47 = vld [vmem:[%s2158_s2 + $0x1b8] sm:$0xff]  ;;  %v808_v5 = vld [vmem:[%s2158_s2 + $0x160] sm:$0xff] }
  0x20   : > { %1216 = vmatmul.mubr.msk.f32.gmra.mrb[2].mxu0 %vm200_vm3, %v172_v34  ;;  %1419 = vmatpush3.bf16.msra.mxu1 %v1418_v16  ;;  %v801_v43 = vld [vmem:[%s2158_s2 + $0x128] sm:$0xff]  ;;  %v823_v60 = vld [vmem:[%s2158_s2 + $0x1d8] sm:$0xff]  ;;  %v826_v8 = vld [vmem:[%s2158_s2 + $0x1f0] sm:$0xff] }
  0x21   : > { %311 = vmatprep.mubr.f32.mxu0 %v1583_v0  ;;  %1385 = vmatpush1.bf16.msk.msra.mxu0 %vm1635_vm2, %v1383_v35  ;;  %v795_v35 = vld [vmem:[%s2158_s2 + $0xf8] sm:$0xff]  ;;  %v1448_v61 = vpack.c.bf16 %v823_v60, %v822_v59  ;;  %v825_v3 = vld [vmem:[%s2158_s2 + $0x1e8] sm:$0xff]  ;;  %v810_v11 = vld [vmem:[%s2158_s2 + $0x170] sm:$0xff] }
  0x22   : > { %1387 = vmatprep.subr.bf16.mxu0 %v1386_v36  ;;  %1421 = vmatprep.subr.bf16.mxu1 %v1420_v24  ;;  %v807_v63 = vld [vmem:[%s2158_s2 + $0x158] sm:$0xff]  ;;  %v1452_v4 = vpack.c.bf16 %v825_v3, %v824_v2  ;;  %v809_v6 = vld [vmem:[%s2158_s2 + $0x168] sm:$0xff] }
  0x23   : > { %v1450_v1 = vpack.c.bf16 %v807_v63, %v806_v62  ;;  %v1454_v7 = vpack.c.bf16 %v809_v6, %v808_v5  ;;  %v827_v9 = vld [vmem:[%s2158_s2 + $0x1f8] sm:$0xff]  ;;  %v833_v2 = vld [vmem:[%s2158_s2 + $0x228] sm:$0xff] }
  0x24   : > { %1217 = vmatmul.mubr.msk.f32.gmra.mrb[4].mxu0 %vm200_vm3, %v173_v37  ;;  %1423 = vmatpush3.bf16.msra.mxu1 %v1422_v28  ;;  %v1456_v10 = vpack.c.bf16 %v827_v9, %v826_v8  ;;  %v811_v12 = vld [vmem:[%s2158_s2 + $0x178] sm:$0xff] }
  0x25   : > { %317 = vmatprep.mubr.f32.mxu0 %v1583_v0  ;;  %v1458_v13 = vpack.c.bf16 %v811_v12, %v810_v11 }
  0x28   : > { %1218 = vmatmul.mubr.msk.f32.gmra.mrb[6].mxu0 %vm200_vm3, %v174_v38 }
  0x29   : > { %323 = vmatprep.mubr.f32.mxu0 %v1583_v0 }
  0x2c   : > { %1219 = vmatmul.mubr.msk.f32.gmra.mrb[8].mxu0 %vm200_vm3, %v175_v39 }
  0x2d   : > { %394 = vmatprep.mubr.f32.mxu0 %v1583_v0 }
  0x30   : > { %1222 = vmatmul.mubr.msk.f32.vlgmr.msra.gmra.mrb[10].mxu0 %vm200_vm3, %v171_v27 }
  0x31   : > { %400 = vmatprep.mubr.f32.mxu0 %v1583_v0  ;;  %1389 = vmatpush1.bf16.msra.mxu0 %v1388_v44 }
  0x32   : > { %1392 = vmatprep.subr.msk.bf16.mxu0 %vm1635_vm2, %v1390_v45  ;;  %v1438_v45 = vpack.c.bf16 %v801_v43, %v800_v42 }
  0x34   : > { %1223 = vmatmul.mubr.msk.f32.gmra.mrb[12].mxu0 %vm200_vm3, %v172_v34 }
  0x35   : > { %406 = vmatprep.mubr.f32.mxu0 %v1583_v0  ;;  %1395 = vmatpush1.bf16.msk.msra.mxu0 %vm1635_vm2, %v1393_v48  ;;  %v1440_v48 = vpack.c.bf16 %v819_v47, %v818_v46 }
  0x36   : > { %1429 = vmatprep.subr.bf16.mxu0 %v1428_v20 }
  0x38   : > { %1224 = vmatmul.mubr.msk.f32.gmra.mrb[14].mxu0 %vm200_vm3, %v173_v37 }
  0x39   : > { %412 = vmatprep.mubr.f32.mxu0 %v1583_v0 }
  0x3c   : > { %1225 = vmatmul.mubr.msk.f32.gmra.mrb[16].mxu0 %vm200_vm3, %v174_v38 }
  0x3d   : > { %418 = vmatprep.mubr.f32.mxu0 %v1583_v0 }
  0x40   : > { %1226 = vmatmul.mubr.msk.f32.gmra.mrb[18].mxu0 %vm200_vm3, %v175_v39 }
  0x41   : > { %489 = vmatprep.mubr.f32.mxu0 %v1583_v0 }
  0x44   : > { %1229 = vmatmul.mubr.msk.f32.vlgmr.msra.gmra.mrb[20].mxu0 %vm200_vm3, %v171_v27  ;;  %v814_v27 = vld [vmem:[%s2158_s2 + $0x190] sm:$0xff] }
  0x45   : > { %495 = vmatprep.mubr.f32.mxu0 %v1583_v0  ;;  %1431 = vmatpush3.bf16.msra.mxu0 %v1430_v21  ;;  %v1432_v32 = vpack.c.bf16 %v815_v29, %v814_v27 }
  0x47   : > { %1433 = vmatprep.subr.bf16.mxu0 %v1432_v32 }
  0x48   : > { %1230 = vmatmul.mubr.msk.f32.gmra.mrb[22].mxu0 %vm200_vm3, %v172_v34  ;;  %v794_v34 = vld [vmem:[%s2158_s2 + $0xf0] sm:$0xff] }
  0x49   : > { %501 = vmatprep.mubr.f32.mxu0 %v1583_v0  ;;  %v1424_v36 = vpack.c.bf16 %v795_v35, %v794_v34  ;;  %1435 = vmatpush3.bf16.msra.mxu0 %v1434_v33  ;;  %v828_v35 = vld [vmem:[%s2158_s2 + $0x200] sm:$0xff] }
  0x4b   : > { %1425 = vmatprep.subr.bf16.mxu1 %v1424_v36  ;;  %v829_v36 = vld [vmem:[%s2158_s2 + $0x208] sm:$0xff] }
  0x4c   : > { %1231 = vmatmul.mubr.msk.f32.gmra.mrb[24].mxu0 %vm200_vm3, %v173_v37  ;;  %v778_v37 = vld [vmem:[%s2158_s2 + $0x70] sm:$0xff] }
  0x4d   : > { %507 = vmatprep.mubr.f32.mxu0 %v1583_v0 }
  0x50   : > { %1232 = vmatmul.mubr.msk.f32.gmra.mrb[26].mxu0 %vm200_vm3, %v174_v38  ;;  %v779_v38 = vld [vmem:[%s2158_s2 + $0x78] sm:$0xff] }
  0x51   : > { %513 = vmatprep.mubr.f32.mxu0 %v1583_v0  ;;  %v1426_v40 = vpack.c.bf16 %v779_v38, %v778_v37 }
  0x53   : > { %1427 = vmatpush3.bf16.msra.mxu1 %v1426_v40 }
  0x54   : > { %1233 = vmatmul.mubr.msk.f32.gmra.mrb[28].mxu0 %vm200_vm3, %v175_v39  ;;  %v816_v39 = vld [vmem:[%s2158_s2 + $0x1a0] sm:$0xff]  ;;  %1460 = vmatprep.subr.bf16.mxu1 %v1585_v49 }
  0x55   : > { %v1436_v44 = vpack.c.bf16 %v817_v41, %v816_v39 }
  0x57   : > { %1437 = vmatprep.subr.bf16.mxu0 %v1436_v44  ;;  %v1461_v44 = vpack.c.bf16 %v829_v36, %v828_v35 }
  0x58   : > { %1439 = vmatpush3.bf16.msra.mxu0 %v1438_v45 }
  0x59   : > { %1441 = vmatprep.subr.bf16.mxu0 %v1440_v48  ;;  %v830_v48 = vld [vmem:[%s2158_s2 + $0x210] sm:$0xff] }
  0x5a   : > { %v1464_v60 = vpack.c.bf16 %v831_v50, %v830_v48  ;;  %v839_v50 = vld [vmem:[%s2158_s2 + $0x258] sm:$0xff] }
  0x5c   : > { %1443 = vmatpush3.bf16.msra.mxu0 %v1442_v52 }
  0x5d   : > { %1445 = vmatprep.subr.bf16.mxu0 %v1444_v55 }
  0x60   : > { %1447 = vmatpush3.bf16.msra.mxu0 %v1446_v58 }
  0x61   : > { %1449 = vmatprep.subr.bf16.mxu0 %v1448_v61 }
  0x64   : > { %1451 = vmatpush3.bf16.msra.mxu0 %v1450_v1  ;;  %v832_v1 = vld [vmem:[%s2158_s2 + $0x220] sm:$0xff] }
  0x65   : > { %1453 = vmatprep.subr.bf16.mxu0 %v1452_v4  ;;  %v1467_v12 = vpack.c.bf16 %v833_v2, %v832_v1  ;;  %v841_v2 = vld [vmem:[%s2158_s2 + $0x268] sm:$0xff] }
  0x68   : > { %1455 = vmatpush3.bf16.msra.mxu0 %v1454_v7 }
  0x69   : > { %1457 = vmatprep.subr.bf16.mxu0 %v1456_v10 }
  0x6c   : > { %1459 = vmatpush3.bf16.msra.mxu0 %v1458_v13 }
  0xef   : > { %v301_v14 = vpop.f32.mrb[0].mxu0 }
  0xf0   : > { %v550_v15 = vmin.f32 %v301_v14, 0.0  ;;  %v303_v16 = vpop.f32.mrb[1].mxu0  ;;  %vm520_vm4 = vcmp.gt.f32.partialorder %v301_v14, 0.0 }
  0xf1   : > { %v551_v17 = vmin.f32 %v303_v16, 0.0  ;;  %vm521_vm5 = vcmp.gt.f32.partialorder %v303_v16, 0.0 }
  0xf2   : > { %v580_v18 = vmul.f32 1.442695, %v550_v15 }
  0xf3   : > { %v582_v19 = vmul.f32 1.442695, %v551_v17  ;;  %v307_v20 = vpop.f32.mrb[2].mxu0  ;;  %v835_v17 = vld [vmem:[%s2158_s2 + $0x238] sm:$0xff] }
  0xf4   : > { %1515 = vpow2.f32 %v580_v18  ;;  %v556_v21 = vmin.f32 %v307_v20, 0.0  ;;  %v1900_v22 = vpop.f32.mrb[3].mxu0  ;;  %vm526_vm6 = vcmp.gt.f32.partialorder %v307_v20, 0.0 }
  0xf5   : > { %1517 = vpow2.f32 %v582_v19  ;;  %v557_v23 = vmin.f32 %v1900_v22, 0.0  ;;  %vm527_vm7 = vcmp.gt.f32.partialorder %v1900_v22, 0.0 }
  0xf6   : > { %v592_v24 = vmul.f32 1.442695, %v556_v21 }
  0xf7   : > { %v594_v25 = vmul.f32 1.442695, %v557_v23  ;;  %v1903_v26 = vpop.f32.mrb[4].mxu0 }
  0xf8   : > { %1519 = vpow2.f32 %v592_v24  ;;  %v562_v27 = vmin.f32 %v1903_v26, 0.0  ;;  %v1906_v28 = vpop.f32.mrb[5].mxu0  ;;  %vm532_vm8 = vcmp.gt.f32.partialorder %v1903_v26, 0.0 }
  0xf9   : > { %1521 = vpow2.f32 %v594_v25  ;;  %v563_v29 = vmin.f32 %v1906_v28, 0.0  ;;  %vm533_vm9 = vcmp.gt.f32.partialorder %v1906_v28, 0.0 }
  0xfa   : > { %v604_v30 = vmul.f32 1.442695, %v562_v27 }
  0xfb   : > { %v606_v31 = vmul.f32 1.442695, %v563_v29  ;;  %v1909_v32 = vpop.f32.mrb[6].mxu0 }
  0xfc   : > { %1523 = vpow2.f32 %v604_v30  ;;  %v568_v33 = vmin.f32 %v1909_v32, 0.0  ;;  %v1912_v34 = vpop.f32.mrb[7].mxu0  ;;  %vm538_vm10 = vcmp.gt.f32.partialorder %v1909_v32, 0.0 }
  0xfd   : > { %1525 = vpow2.f32 %v606_v31  ;;  %v569_v37 = vmin.f32 %v1912_v34, 0.0  ;;  %vm539_vm11 = vcmp.gt.f32.partialorder %v1912_v34, 0.0 }
  0xfe   : > { %v1516_v38 = vpop.eup %1515  ;;  %v616_v39 = vmul.f32 1.442695, %v568_v33  ;;  %v837_v33 = vld [vmem:[%s2158_s2 + $0x248] sm:$0xff] }
  0xff   : > { %v1518_v40 = vpop.eup %1517  ;;  %v1234_v41 = vadd.f32 -1.0, %v1516_v38  ;;  %v618_v42 = vmul.f32 1.442695, %v569_v37  ;;  %v1921_v43 = vpop.f32.mrb[8].mxu0 }
 0x100   : > { %v1235_v45 = vadd.f32 -1.0, %v1518_v40  ;;  %1527 = vpow2.f32 %v616_v39  ;;  %v574_v46 = vmin.f32 %v1921_v43, 0.0  ;;  %v1924_v47 = vpop.f32.mrb[9].mxu0  ;;  %vm544_vm12 = vcmp.gt.f32.partialorder %v1921_v43, 0.0 }
 0x101   : > { %v670_v51 = vsel %vm520_vm4, %v301_v14, %v1234_v41  ;;  %1529 = vpow2.f32 %v618_v42  ;;  %v575_v52 = vmin.f32 %v1924_v47, 0.0  ;;  %vm545_vm13 = vcmp.gt.f32.partialorder %v1924_v47, 0.0 }
 0x102   : > { %v1520_v53 = vpop.eup %1519  ;;  %v671_v54 = vsel %vm521_vm5, %v303_v16, %v1235_v45  ;;  %v628_v55 = vmul.f32 1.442695, %v574_v46  ;;  %v834_v16 = vld [vmem:[%s2158_s2 + $0x230] sm:$0xff] }
 0x103   : > { %v1522_v56 = vpop.eup %1521  ;;  %v1240_v57 = vadd.f32 -1.0, %v1520_v53  ;;  %v630_v58 = vmul.f32 1.442695, %v575_v52  ;;  %v1933_v59 = vpop.f32.mrb[10].mxu0  ;;  %940 = vmatprep.mubr.f32.mxu1 %v671_v54  ;;  %v1470_v29 = vpack.c.bf16 %v835_v17, %v834_v16  ;;  %v843_v17 = vld [vmem:[%s2158_s2 + $0x278] sm:$0xff] }
 0x104   : > { %v1241_v61 = vadd.f32 -1.0, %v1522_v56  ;;  %1531 = vpow2.f32 %v628_v55  ;;  %v552_v62 = vmin.f32 %v1933_v59, 0.0  ;;  %v1936_v63 = vpop.f32.mrb[11].mxu0  ;;  %941 = vmatmul.mubr.f32.vlgmr.msra.gmra.mrb[0].mxu1 %v670_v51  ;;  %vm522_vm14 = vcmp.gt.f32.partialorder %v1933_v59, 0.0 }
 0x105   : > { %v676_v3 = vsel %vm526_vm6, %v307_v20, %v1240_v57  ;;  %1533 = vpow2.f32 %v630_v58  ;;  %v553_v4 = vmin.f32 %v1936_v63, 0.0  ;;  %1462 = vmatpush1.bf16.msra.mxu1 %v1461_v44  ;;  %vm523_vm15 = vcmp.gt.f32.partialorder %v1936_v63, 0.0 }
 0x106   : > { %v1524_v5 = vpop.eup %1523  ;;  %v677_v6 = vsel %vm527_vm7, %v1900_v22, %v1241_v61  ;;  %v584_v7 = vmul.f32 1.442695, %v552_v62  ;;  %1463 = vmatprep.subr.bf16.mxu1 %v1585_v49 }
 0x107   : > { %v1526_v8 = vpop.eup %1525  ;;  %v1246_v9 = vadd.f32 -1.0, %v1524_v5  ;;  %v586_v10 = vmul.f32 1.442695, %v553_v4  ;;  %v1948_v11 = vpop.f32.mrb[12].mxu0  ;;  %945 = vmatprep.mubr.f32.mxu1 %v677_v6 }
 0x108   : > { %v1247_v13 = vadd.f32 -1.0, %v1526_v8  ;;  %1535 = vpow2.f32 %v584_v7  ;;  %v558_v14 = vmin.f32 %v1948_v11, 0.0  ;;  %v1952_v15 = vpop.f32.mrb[13].mxu0  ;;  %946 = vmatmul.mubr.f32.gmra.mrb[2].mxu1 %v676_v3  ;;  %vm528_vm0 = vcmp.gt.f32.partialorder %v1948_v11, 0.0 }
 0x109   : > { %v682_v18 = vsel %vm532_vm8, %v1903_v26, %v1246_v9  ;;  %1537 = vpow2.f32 %v586_v10  ;;  %v559_v19 = vmin.f32 %v1952_v15, 0.0  ;;  %1465 = vmatpush1.bf16.msra.mxu1 %v1464_v60  ;;  %vm529_vm1 = vcmp.gt.f32.partialorder %v1952_v15, 0.0 }
 0x10a   : > { %v1528_v20 = vpop.eup %1527  ;;  %v683_v21 = vsel %vm533_vm9, %v1906_v28, %v1247_v13  ;;  %v596_v22 = vmul.f32 1.442695, %v558_v14  ;;  %1466 = vmatprep.subr.bf16.mxu1 %v1585_v49  ;;  %v836_v28 = vld [vmem:[%s2158_s2 + $0x240] sm:$0xff]  ;;  %vm708_vm8 = vcmask 801792  }
 0x10b   : > { %v1530_v23 = vpop.eup %1529  ;;  %v1252_v24 = vadd.f32 -1.0, %v1528_v20  ;;  %v598_v25 = vmul.f32 1.442695, %v559_v19  ;;  %v1965_v27 = vpop.f32.mrb[14].mxu0  ;;  %950 = vmatprep.mubr.f32.mxu1 %v683_v21  ;;  %v1473_v45 = vpack.c.bf16 %v837_v33, %v836_v28  ;;  %v845_v33 = vld [vmem:[%s2158_s2 + $0x288] sm:$0xff] }
 0x10c   : > { %v1253_v26 = vadd.f32 -1.0, %v1530_v23  ;;  %1539 = vpow2.f32 %v596_v22  ;;  %v564_v30 = vmin.f32 %v1965_v27, 0.0  ;;  %v1969_v31 = vpop.f32.mrb[15].mxu0  ;;  %951 = vmatmul.mubr.f32.gmra.mrb[4].mxu1 %v682_v18  ;;  %vm534_vm2 = vcmp.gt.f32.partialorder %v1965_v27, 0.0 }
 0x10d   : > { %v688_v35 = vsel %vm538_vm10, %v1909_v32, %v1252_v24  ;;  %1541 = vpow2.f32 %v598_v25  ;;  %v565_v36 = vmin.f32 %v1969_v31, 0.0  ;;  %1468 = vmatpush1.bf16.msra.mxu1 %v1467_v12  ;;  %vm535_vm3 = vcmp.gt.f32.partialorder %v1969_v31, 0.0 }
 0x10e   : > { %v1532_v37 = vpop.eup %1531  ;;  %v689_v38 = vsel %vm539_vm11, %v1912_v34, %v1253_v26  ;;  %v608_v39 = vmul.f32 1.442695, %v564_v30  ;;  %1469 = vmatprep.subr.bf16.mxu1 %v1585_v49  ;;  %v838_v34 = vld [vmem:[%s2158_s2 + $0x250] sm:$0xff] }
 0x10f   : > { %v1534_v40 = vpop.eup %1533  ;;  %v1258_v41 = vadd.f32 -1.0, %v1532_v37  ;;  %v610_v42 = vmul.f32 1.442695, %v565_v36  ;;  %v1982_v44 = vpop.f32.mrb[16].mxu0  ;;  %955 = vmatprep.mubr.f32.mxu1 %v689_v38  ;;  %v1476_v61 = vpack.c.bf16 %v839_v50, %v838_v34  ;;  %v847_v50 = vld [vmem:[%s2158_s2 + $0x298] sm:$0xff] }
 0x110   : > { %v1259_v32 = vadd.f32 -1.0, %v1534_v40  ;;  %1543 = vpow2.f32 %v608_v39  ;;  %v570_v46 = vmin.f32 %v1982_v44, 0.0  ;;  %v1986_v48 = vpop.f32.mrb[17].mxu0  ;;  %956 = vmatmul.mubr.f32.gmra.mrb[6].mxu1 %v688_v35  ;;  %vm540_vm4 = vcmp.gt.f32.partialorder %v1982_v44, 0.0 }
 0x111   : > { %v694_v51 = vsel %vm544_vm12, %v1921_v43, %v1258_v41  ;;  %1545 = vpow2.f32 %v610_v42  ;;  %v571_v52 = vmin.f32 %v1986_v48, 0.0  ;;  %1471 = vmatpush1.bf16.msra.mxu1 %v1470_v29  ;;  %vm541_vm5 = vcmp.gt.f32.partialorder %v1986_v48, 0.0 }
 0x112   : > { %v1536_v53 = vpop.eup %1535  ;;  %v695_v54 = vsel %vm545_vm13, %v1924_v47, %v1259_v32  ;;  %v620_v55 = vmul.f32 1.442695, %v570_v46  ;;  %1472 = vmatprep.subr.bf16.mxu1 %v1585_v49  ;;  %v840_v47 = vld [vmem:[%s2158_s2 + $0x260] sm:$0xff] }
 0x113   : > { %v1538_v56 = vpop.eup %1537  ;;  %v1236_v57 = vadd.f32 -1.0, %v1536_v53  ;;  %v622_v58 = vmul.f32 1.442695, %v571_v52  ;;  %v1999_v60 = vpop.f32.mrb[18].mxu0  ;;  %960 = vmatprep.mubr.f32.mxu1 %v695_v54  ;;  %v1479_v13 = vpack.c.bf16 %v841_v2, %v840_v47  ;;  %v849_v2 = vld [vmem:[%s2158_s2 + $0x2a8] sm:$0xff] }
 0x114   : > { %v1237_v43 = vadd.f32 -1.0, %v1538_v56  ;;  %1547 = vpow2.f32 %v620_v55  ;;  %v576_v62 = vmin.f32 %v1999_v60, 0.0  ;;  %v2003_v1 = vpop.f32.mrb[19].mxu0  ;;  %961 = vmatmul.mubr.f32.gmra.mrb[8].mxu1 %v694_v51  ;;  %vm546_vm6 = vcmp.gt.f32.partialorder %v1999_v60, 0.0 }
 0x115   : > { %v672_v3 = vsel %vm522_vm14, %v1933_v59, %v1236_v57  ;;  %1549 = vpow2.f32 %v622_v58  ;;  %v577_v4 = vmin.f32 %v2003_v1, 0.0  ;;  %1474 = vmatpush1.bf16.msra.mxu1 %v1473_v45  ;;  %vm547_vm7 = vcmp.gt.f32.partialorder %v2003_v1, 0.0 }
 0x116   : > { %v1540_v5 = vpop.eup %1539  ;;  %v673_v6 = vsel %vm523_vm15, %v1936_v63, %v1237_v43  ;;  %v632_v7 = vmul.f32 1.442695, %v576_v62  ;;  %1475 = vmatprep.subr.bf16.mxu1 %v1585_v49  ;;  %v842_v63 = vld [vmem:[%s2158_s2 + $0x270] sm:$0xff] }
 0x117   : > { %v1542_v8 = vpop.eup %1541  ;;  %v1242_v9 = vadd.f32 -1.0, %v1540_v5  ;;  %v634_v10 = vmul.f32 1.442695, %v577_v4  ;;  %v2016_v12 = vpop.f32.mrb[20].mxu0  ;;  %1030 = vmatprep.mubr.f32.mxu0 %v673_v6  ;;  %v1482_v26 = vpack.c.bf16 %v843_v17, %v842_v63 }
 0x118   : > { %v1243_v59 = vadd.f32 -1.0, %v1542_v8  ;;  %1551 = vpow2.f32 %v632_v7  ;;  %v554_v14 = vmin.f32 %v2016_v12, 0.0  ;;  %v2020_v16 = vpop.f32.mrb[21].mxu0  ;;  %1031 = vmatmul.mubr.f32.vlgmr.msra.gmra.mrb[30].mxu0 %v672_v3  ;;  %vm524_vm9 = vcmp.gt.f32.partialorder %v2016_v12, 0.0 }
 0x119   : > { %v678_v18 = vsel %vm528_vm0, %v1948_v11, %v1242_v9  ;;  %1553 = vpow2.f32 %v634_v10  ;;  %v555_v19 = vmin.f32 %v2020_v16, 0.0  ;;  %1477 = vmatpush1.bf16.msra.mxu1 %v1476_v61  ;;  %vm525_vm10 = vcmp.gt.f32.partialorder %v2020_v16, 0.0 }
 0x11a   : > { %v1544_v20 = vpop.eup %1543  ;;  %v679_v21 = vsel %vm529_vm1, %v1952_v15, %v1243_v59  ;;  %v588_v22 = vmul.f32 1.442695, %v554_v14  ;;  %1478 = vmatprep.subr.bf16.mxu1 %v1585_v49  ;;  %v844_v15 = vld [vmem:[%s2158_s2 + $0x280] sm:$0xff] }
 0x11b   : > { %v1546_v23 = vpop.eup %1545  ;;  %v1248_v24 = vadd.f32 -1.0, %v1544_v20  ;;  %v590_v25 = vmul.f32 1.442695, %v555_v19  ;;  %v2033_v29 = vpop.f32.mrb[22].mxu0  ;;  %1035 = vmatprep.mubr.f32.mxu0 %v679_v21  ;;  %v1485_v32 = vpack.c.bf16 %v845_v33, %v844_v15  ;;  %v850_v21 = vld [vmem:[%s2158_s2 + $0x2b0] sm:$0xff]  ;;  %v852_v15 = vld [vmem:[%s2158_s2 + $0x2c0] sm:$0xff] }
 0x11c   : > { %v1249_v11 = vadd.f32 -1.0, %v1546_v23  ;;  %1555 = vpow2.f32 %v588_v22  ;;  %v560_v30 = vmin.f32 %v2033_v29, 0.0  ;;  %v2037_v28 = vpop.f32.mrb[23].mxu0  ;;  %1036 = vmatmul.mubr.f32.gmra.mrb[32].mxu0 %v678_v18  ;;  %vm530_vm11 = vcmp.gt.f32.partialorder %v2033_v29, 0.0  ;;  %v853_v33 = vld [vmem:[%s2158_s2 + $0x2c8] sm:$0xff] }
 0x11d   : > { %v684_v35 = vsel %vm534_vm2, %v1965_v27, %v1248_v24  ;;  %1557 = vpow2.f32 %v590_v25  ;;  %v561_v36 = vmin.f32 %v2037_v28, 0.0  ;;  %1480 = vmatpush1.bf16.msra.mxu1 %v1479_v13  ;;  %vm531_vm12 = vcmp.gt.f32.partialorder %v2037_v28, 0.0 }
 0x11e   : > { %v1548_v37 = vpop.eup %1547  ;;  %v685_v38 = vsel %vm535_vm3, %v1969_v31, %v1249_v11  ;;  %v600_v39 = vmul.f32 1.442695, %v560_v30  ;;  %1481 = vmatprep.subr.bf16.mxu1 %v1585_v49  ;;  %v846_v31 = vld [vmem:[%s2158_s2 + $0x290] sm:$0xff]  ;;  %vm872_vm3 = vcmask 1041408  }
 0x11f   : > { %v1550_v40 = vpop.eup %1549  ;;  %v1254_v41 = vadd.f32 -1.0, %v1548_v37  ;;  %v602_v42 = vmul.f32 1.442695, %v561_v36  ;;  %v2050_v45 = vpop.f32.mrb[24].mxu0  ;;  %1040 = vmatprep.mubr.f32.mxu0 %v685_v38  ;;  %v1488_v43 = vpack.c.bf16 %v847_v50, %v846_v31 }
 0x120   : > { %v1255_v27 = vadd.f32 -1.0, %v1550_v40  ;;  %1559 = vpow2.f32 %v600_v39  ;;  %v566_v46 = vmin.f32 %v2050_v45, 0.0  ;;  %v2054_v34 = vpop.f32.mrb[25].mxu0  ;;  %1041 = vmatmul.mubr.f32.gmra.mrb[34].mxu0 %v684_v35  ;;  %vm536_vm13 = vcmp.gt.f32.partialorder %v2050_v45, 0.0 }
 0x121   : > { %v690_v51 = vsel %vm540_vm4, %v1982_v44, %v1254_v41  ;;  %1561 = vpow2.f32 %v602_v42  ;;  %v567_v52 = vmin.f32 %v2054_v34, 0.0  ;;  %1483 = vmatpush1.bf16.msra.mxu1 %v1482_v26  ;;  %vm537_vm14 = vcmp.gt.f32.partialorder %v2054_v34, 0.0  ;;  %v854_v41 = vld [vmem:[%s2158_s2 + $0x2d0] sm:$0xff]  ;;  %v855_v42 = vld [vmem:[%s2158_s2 + $0x2d8] sm:$0xff] }
 0x122   : > { %v1552_v53 = vpop.eup %1551  ;;  %v691_v54 = vsel %vm541_vm5, %v1986_v48, %v1255_v27  ;;  %v612_v55 = vmul.f32 1.442695, %v566_v46  ;;  %1484 = vmatprep.subr.bf16.mxu1 %v1585_v49  ;;  %v848_v48 = vld [vmem:[%s2158_s2 + $0x2a0] sm:$0xff] }
 0x123   : > { %v1554_v56 = vpop.eup %1553  ;;  %v1260_v57 = vadd.f32 -1.0, %v1552_v53  ;;  %v614_v58 = vmul.f32 1.442695, %v567_v52  ;;  %v2067_v61 = vpop.f32.mrb[26].mxu0  ;;  %1045 = vmatprep.mubr.f32.mxu0 %v691_v54 }
 0x124   : > { %v1261_v44 = vadd.f32 -1.0, %v1554_v56  ;;  %1563 = vpow2.f32 %v612_v55  ;;  %v572_v62 = vmin.f32 %v2067_v61, 0.0  ;;  %v2071_v47 = vpop.f32.mrb[27].mxu0  ;;  %1046 = vmatmul.mubr.f32.gmra.mrb[36].mxu0 %v690_v51  ;;  %vm542_vm15 = vcmp.gt.f32.partialorder %v2067_v61, 0.0 }
 0x125   : > { %v696_v3 = vsel %vm546_vm6, %v1999_v60, %v1260_v57  ;;  %1565 = vpow2.f32 %v614_v58  ;;  %v573_v4 = vmin.f32 %v2071_v47, 0.0  ;;  %1486 = vmatpush1.bf16.msra.mxu1 %v1485_v32  ;;  %v1491_v60 = vpack.c.bf16 %v849_v2, %v848_v48 }
 0x126   : > { %v1556_v5 = vpop.eup %1555  ;;  %v697_v6 = vsel %vm547_vm7, %v2003_v1, %v1261_v44  ;;  %v624_v7 = vmul.f32 1.442695, %v572_v62  ;;  %1487 = vmatprep.subr.bf16.mxu1 %v1585_v49  ;;  %vm543_vm0 = vcmp.gt.f32.partialorder %v2071_v47, 0.0 }
 0x127   : > { %v1558_v8 = vpop.eup %1557  ;;  %v1238_v9 = vadd.f32 -1.0, %v1556_v5  ;;  %v626_v10 = vmul.f32 1.442695, %v573_v4  ;;  %v2084_v13 = vpop.f32.mrb[28].mxu0  ;;  %1050 = vmatprep.mubr.f32.mxu0 %v697_v6 }
 0x128   : > { %v1239_v59 = vadd.f32 -1.0, %v1558_v8  ;;  %1567 = vpow2.f32 %v624_v7  ;;  %v578_v14 = vmin.f32 %v2084_v13, 0.0  ;;  %v2088_v63 = vpop.f32.mrb[29].mxu0  ;;  %1051 = vmatmul.mubr.f32.gmra.mrb[38].mxu0 %v696_v3  ;;  %vm548_vm1 = vcmp.gt.f32.partialorder %v2084_v13, 0.0 }
 0x129   : > { %v2091_v1 = vsel %vm524_vm9, %v2016_v12, %v1238_v9  ;;  %1569 = vpow2.f32 %v626_v10  ;;  %v579_v17 = vmin.f32 %v2088_v63, 0.0  ;;  %1489 = vmatpush1.bf16.msra.mxu1 %v1488_v43  ;;  %v851_v12 = vld [vmem:[%s2158_s2 + $0x2b8] sm:$0xff]  ;;  %vm549_vm2 = vcmp.gt.f32.partialorder %v2088_v63, 0.0 }
 0x12a   : > { %v1560_v18 = vpop.eup %1559  ;;  %v675_v19 = vsel %vm525_vm10, %v2020_v16, %v1239_v59  ;;  %v636_v20 = vmul.f32 1.442695, %v578_v14  ;;  %1490 = vmatprep.subr.bf16.mxu1 %v1585_v49  ;;  %v1494_v26 = vpack.c.bf16 %v851_v12, %v850_v21 }
 0x12b   : > { %v1562_v22 = vpop.eup %1561  ;;  %709 = vst.msk [vmem:[#allocation2 + $0x28] sm:$0xff] %vm708_vm8, %v675_v19  ;;  %v1244_v23 = vadd.f32 -1.0, %v1560_v18  ;;  %v638_v24 = vmul.f32 1.442695, %v579_v17 }
 0x12c   : > { %v1245_v25 = vadd.f32 -1.0, %v1562_v22  ;;  %1571 = vpow2.f32 %v636_v20 }
 0x12d   : > { %v680_v16 = vsel %vm530_vm11, %v2033_v29, %v1244_v23  ;;  %1573 = vpow2.f32 %v638_v24  ;;  %1492 = vmatpush1.bf16.msra.mxu1 %v1491_v60 }
 0x12e   : > { %v1564_v11 = vpop.eup %1563  ;;  %v681_v30 = vsel %vm531_vm12, %v2037_v28, %v1245_v25  ;;  %1493 = vmatprep.subr.bf16.mxu1 %v1585_v49  ;;  %v1497_v28 = vpack.c.bf16 %v853_v33, %v852_v15 }
 0x12f   : > { %v1566_v35 = vpop.eup %1565  ;;  %715 = vst.msk [vmem:[#allocation2 + $0x58] sm:$0xff] %vm708_vm8, %v681_v30  ;;  %v1250_v29 = vadd.f32 -1.0, %v1564_v11 }
 0x130   : > { %v1251_v36 = vadd.f32 -1.0, %v1566_v35 }
 0x131   : > { %v686_v37 = vsel %vm536_vm13, %v2050_v45, %v1250_v29  ;;  %1495 = vmatpush1.bf16.msra.mxu1 %v1494_v26 }
 0x132   : > { %v1568_v38 = vpop.eup %1567  ;;  %v687_v39 = vsel %vm537_vm14, %v2054_v34, %v1251_v36  ;;  %v739_v40 = vld [vmem:[#allocation2 + $0x28] sm:$0xff]  ;;  %1496 = vmatprep.subr.bf16.mxu1 %v1585_v49  ;;  %v1500_v34 = vpack.c.bf16 %v855_v42, %v854_v41 }
 0x133   : > { %v1570_v32 = vpop.eup %1569  ;;  %721 = vst.msk [vmem:[#allocation2 + $0x88] sm:$0xff] %vm708_vm8, %v687_v39  ;;  %v1256_v45 = vadd.f32 -1.0, %v1568_v38  ;;  %1265 = vmatprep.mubr.msk.f32.mxu1 %vm708_vm8, %v739_v40 }
 0x134   : > { %v1257_v27 = vadd.f32 -1.0, %v1570_v32 }
 0x135   : > { %v692_v46 = vsel %vm542_vm15, %v2067_v61, %v1256_v45  ;;  %1498 = vmatpush1.bf16.msra.mxu1 %v1497_v28 }
 0x136   : > { %v1572_v31 = vpop.eup %1571  ;;  %v693_v50 = vsel %vm543_vm0, %v2071_v47, %v1257_v27  ;;  %1499 = vmatprep.subr.bf16.mxu1 %v1585_v49  ;;  %v856_v49 = vld [vmem:[%s2158_s2 + $0x2e0] sm:$0x3]  ;;  %v745_v56 = vld [vmem:[#allocation2 + $0x58] sm:$0xff] }
 0x137   : > { %v1574_v51 = vpop.eup %1573  ;;  %727 = vst.msk [vmem:[#allocation2 + $0xb8] sm:$0xff] %vm708_vm8, %v693_v50  ;;  %v1262_v52 = vadd.f32 -1.0, %v1572_v31 }
 0x138   : > { %v1263_v53 = vadd.f32 -1.0, %v1574_v51 }
 0x139   : > { %v698_v54 = vsel %vm548_vm1, %v2084_v13, %v1262_v52  ;;  %1501 = vmatpush1.bf16.msra.mxu1 %v1500_v34 }
 0x13a   : > { %v699_v55 = vsel %vm549_vm2, %v2088_v63, %v1263_v53  ;;  %1112 = vmatprep.subr.mxu1 %v1583_v0  ;;  %v751_v57 = vld [vmem:[#allocation2 + $0x88] sm:$0xff] }
 0x13b   : > { %733 = vst.msk [vmem:[#allocation2 + $0xe8] sm:$0xff] %vm708_vm8, %v699_v55 }
 0x13d   : > { %1264 = vmatpush1.msk.msra.mxu1 %vm872_vm3, %v856_v49 }
 0x13e   : > { %1121 = vmatmul.mubr.f32.vlgmr.msra.gmra.mrb[10].mxu1 %v2091_v1  ;;  %v757_v58 = vld [vmem:[#allocation2 + $0xb8] sm:$0xff] }
 0x13f   : > { %1266 = vmatprep.mubr.msk.f32.mxu1 %vm708_vm8, %v745_v56 }
 0x142   : > { %1126 = vmatmul.mubr.f32.gmra.mrb[12].mxu1 %v680_v16  ;;  %v763_v0 = vld [vmem:[#allocation2 + $0xe8] sm:$0xff] }
 0x143   : > { %1267 = vmatprep.mubr.msk.f32.mxu1 %vm708_vm8, %v751_v57 }
 0x146   : > { %1131 = vmatmul.mubr.f32.gmra.mrb[14].mxu1 %v686_v37 }
 0x147   : > { %1268 = vmatprep.mubr.msk.f32.mxu1 %vm708_vm8, %v757_v58 }
 0x14a   : > { %1136 = vmatmul.mubr.f32.gmra.mrb[16].mxu1 %v692_v46 }
 0x14b   : > { %1269 = vmatprep.mubr.msk.f32.mxu1 %vm708_vm8, %v763_v0 }
 0x14e   : > { %1141 = vmatmul.mubr.f32.gmra.mrb[18].mxu1 %v698_v54 }
 0x1d7   : > { %v1304_v61 = vpop.f32.mrb[0].mxu1 }
 0x1d8   : > { %v1305_v43 = vpop.f32.mrb[1].mxu1 }
 0x1d9   : > { %v1306_v44 = vadd.f32 %v1305_v43, %v1304_v61 }
 0x1db   : > { %v1307_v62 = vpop.f32.mrb[2].mxu1 }
 0x1dc   : > { %v1308_v47 = vpop.f32.mrb[3].mxu1 }
 0x1dd   : > { %v1309_v48 = vadd.f32 %v1308_v47, %v1307_v62 }
 0x1df   : > { %v1310_v2 = vpop.f32.mrb[4].mxu1 }
 0x1e0   : > { %v1311_v3 = vpop.f32.mrb[5].mxu1 }
 0x1e1   : > { %v1312_v4 = vadd.f32 %v1311_v3, %v1310_v2 }
 0x1e3   : > { %v1313_v5 = vpop.f32.mrb[6].mxu1 }
 0x1e4   : > { %v1314_v6 = vpop.f32.mrb[7].mxu1 }
 0x1e5   : > { %v1315_v7 = vadd.f32 %v1314_v6, %v1313_v5 }
 0x1e7   : > { %v1316_v8 = vpop.f32.mrb[8].mxu1 }
 0x1e8   : > { %v1317_v9 = vpop.f32.mrb[9].mxu1 }
 0x1e9   : > { %v1318_v10 = vadd.f32 %v1317_v9, %v1316_v8 }
 0x1eb   : > { %v1351_v13 = vpop.f32.mrb[30].mxu0 }
 0x1ec   : > { %v1352_v60 = vpop.f32.mrb[31].mxu0 }
 0x1ed   : > { %v1353_v59 = vadd.f32 %v1352_v60, %v1351_v13 }
 0x1ef   : > { %v1354_v14 = vpop.f32.mrb[32].mxu0  ;;  %v1033_v63 = vadd.f32 %v1353_v59, %v1306_v44 }
 0x1f0   : > { %v1355_v1 = vpop.f32.mrb[33].mxu0 }
 0x1f1   : > { %v1356_v17 = vadd.f32 %v1355_v1, %v1354_v14 }
 0x1f3   : > { %v1357_v18 = vpop.f32.mrb[34].mxu0  ;;  %v1038_v19 = vadd.f32 %v1356_v17, %v1309_v48 }
 0x1f4   : > { %v1358_v20 = vpop.f32.mrb[35].mxu0 }
 0x1f5   : > { %v1359_v21 = vadd.f32 %v1358_v20, %v1357_v18 }
 0x1f7   : > { %v1360_v12 = vpop.f32.mrb[36].mxu0  ;;  %v1043_v22 = vadd.f32 %v1359_v21, %v1312_v4 }
 0x1f8   : > { %v1361_v23 = vpop.f32.mrb[37].mxu0 }
 0x1f9   : > { %v1362_v24 = vadd.f32 %v1361_v23, %v1360_v12 }
 0x1fb   : > { %v1363_v25 = vpop.f32.mrb[38].mxu0  ;;  %v1048_v16 = vadd.f32 %v1362_v24, %v1315_v7 }
 0x1fc   : > { %v1364_v26 = vpop.f32.mrb[39].mxu0 }
 0x1fd   : > { %v1365_v11 = vadd.f32 %v1364_v26, %v1363_v25 }
 0x1ff   : > { %v1053_v30 = vadd.f32 %v1365_v11, %v1318_v10 }
 0x211   : > { %v1122_v15 = vpop.f32.mrb[10].mxu1 }
 0x212   : > { %v1123_v33 = vadd.f32 %v1122_v15, %v1033_v63  ;;  %v1124_v35 = vpop.f32.mrb[11].mxu1 }
 0x214   : > { %1146 = vst [vmem:[%s170_s17] sm:$0xff] %v1123_v33 }
 0x215   : > { %v1127_v29 = vpop.f32.mrb[12].mxu1 }
 0x216   : > { %v1128_v36 = vadd.f32 %v1127_v29, %v1038_v19  ;;  %v1129_v37 = vpop.f32.mrb[13].mxu1 }
 0x218   : > { %1147 = vst [vmem:[%s170_s17 + $0x8] sm:$0xff] %v1128_v36 }
 0x219   : > { %v1132_v28 = vpop.f32.mrb[14].mxu1 }
 0x21a   : > { %v1133_v38 = vadd.f32 %v1132_v28, %v1043_v22  ;;  %v1134_v39 = vpop.f32.mrb[15].mxu1 }
 0x21c   : > { %1148 = vst [vmem:[%s170_s17 + $0x10] sm:$0xff] %v1133_v38 }
 0x21d   : > { %v1137_v40 = vpop.f32.mrb[16].mxu1 }
 0x21e   : > { %v1138_v41 = vadd.f32 %v1137_v40, %v1048_v16  ;;  %v1139_v42 = vpop.f32.mrb[17].mxu1 }
 0x220   : > { %1149 = vst [vmem:[%s170_s17 + $0x18] sm:$0xff] %v1138_v41 }
 0x221   : > { %v1142_v32 = vpop.f32.mrb[18].mxu1 }
 0x222   : > { %v1143_v45 = vadd.f32 %v1142_v32, %v1053_v30  ;;  %v1144_v27 = vpop.f32.mrb[19].mxu1 }
 0x224   : > { %1150 = vst [vmem:[%s170_s17 + $0x20] sm:$0xff] %v1143_v45 }
 0x225 PF: > { %s13_s12 = sadd.s32 1, %s1581_s12  }
 0x226   : > { %p10_p4 = scmp.ge.s32.totalorder %s13_s12, 4  }
 0x228   :  { %12 = sbr.rel (!%p10_p4) target bundleno = 1 (0x1), region = 63 }

</bundles_post_ra>
